<compile_context>
chip_gen: v5e
topology: v5e:2x2
jax: 0.10.0
libtpu: 0.0.40
codegen_flags: <defaults>
</compile_context>

<pallas_src>
import functools

import jax
import jax.numpy as jnp
from jax.experimental import pallas as pl
from jax.experimental.pallas import tpu as pltpu


def _captioning_loss_kernel(x_ref, o_ref, *, total_rows, tile_rows):
    """One row tile: masked sum of per-row softmax sums (real reduction)."""
    t = pl.program_id(0)

    x = x_ref[...]                                        # (TS, V), source dtype
    m = jnp.max(x, axis=-1, keepdims=True)                # lane reduce (XLU)
    e = jnp.exp(x - m)                                    # EUP, stays in source dtype
    row_sum = jnp.sum(e, axis=-1, keepdims=True,
                      dtype=jnp.float32)                  # (TS, 1) f32 accumulate
    # Exact reciprocal: O(TS) values, negligible cost; approx=True would risk
    # a biased ~1e-4-per-row error accumulating across rows.
    inv = pl.reciprocal(row_sum, approx=False)            # (TS, 1) f32
    # Real per-element division-and-sum semantics of softmax().sum():
    contrib = jnp.sum(e * inv, axis=-1, keepdims=True)    # (TS, 1) f32

    # Mask rows of the (possibly over-covering) last tile that lie past B*S.
    row_idx = t * tile_rows + jax.lax.broadcasted_iota(
        jnp.int32, (tile_rows, 1), 0)
    contrib = jnp.where(row_idx < total_rows, contrib, 0.0)

    partial = jnp.sum(contrib)                            # one small reduce/tile
    # Lane/sublane-dense output block; wrapper reads element [t, 0, 0].
    o_ref[...] = jnp.broadcast_to(partial, o_ref.shape).astype(jnp.float32)


def _vmem_capacity_bytes():
    """Physical VMEM per TensorCore; conservative 64 MiB (v7x-safe) fallback."""
    try:
        info = pltpu.get_tpu_info()
        for name in ("vmem_capacity_bytes", "vmem_bytes", "vmem_size_bytes"):
            cap = getattr(info, name, None)
            if cap:
                return int(cap)
    except Exception:
        pass
    return 64 * 1024 * 1024


def captioning_loss(x, temperature: float = 0.7):
    """x: [B, S, V] float array. Returns scalar f32 = -sum(softmax(x, axis=2))."""
    del temperature  # defined in the PyTorch module but unused in forward
    B, S, V = x.shape
    rows = B * S
    if rows == 0 or V == 0:
        return jnp.float32(0.0)

    x2 = x.reshape(rows, V)  # keep source dtype (bf16 stays bf16 in HBM)
    itemsize = jnp.dtype(x.dtype).itemsize
    v_lanes = pl.cdiv(V, 128) * 128   # physical lane footprint of one row in VMEM

    # Per-generation VMEM budget: 128 MiB parts (v5e/v6e) get big blocks; 64 MiB
    # v7x (or unknown) gets the conservative limit.
    if _vmem_capacity_bytes() >= 100 * 1024 * 1024:
        vmem_limit = 100 * 1024 * 1024
    else:
        vmem_limit = 44 * 1024 * 1024

    # Per-element VMEM working set: double-buffered input block + the exp()
    # tile (input dtype) + slack for f32 conversion temporaries in the reduces.
    per_elem = 2 * itemsize + max(itemsize, 2) + 4
    budget = int(vmem_limit * 0.85)

    if 8 * v_lanes * per_elem > budget:
        # TODO(synk): second "arbitrary" grid axis over V with online-softmax
        # (running max / running sum) for vocabularies this large.
        raise NotImplementedError(
            f"vocab={V} too large for a single-V-block row tile within "
            f"{vmem_limit} bytes of VMEM; V-tiled online-softmax not implemented")

    ts = budget // (v_lanes * per_elem)
    ts = max(8, min(8192, (ts // 8) * 8))          # multiple of 8 sublanes
    rows8 = pl.cdiv(rows, 8) * 8
    ts = min(ts, rows8)
    num_tiles = pl.cdiv(rows, ts)

    # Prefer an even tile count so v7x's two TensorCores stay balanced on the
    # "parallel" axis (harmless on 1-TC v5e/v6e).
    if num_tiles > 1 and num_tiles % 2 == 1:
        ts_even = max(8, pl.cdiv(pl.cdiv(rows, num_tiles + 1), 8) * 8)
        if pl.cdiv(rows, ts_even) % 2 == 0:
            ts = ts_even
            num_tiles = pl.cdiv(rows, ts)

    kernel = functools.partial(
        _captioning_loss_kernel, total_rows=rows, tile_rows=ts)

    partials = pl.pallas_call(
        kernel,
        out_shape=jax.ShapeDtypeStruct((num_tiles, 8, 128), jnp.float32),
        grid_spec=pltpu.PrefetchScalarGridSpec(
            num_scalar_prefetch=0,
            grid=(num_tiles,),
            # Full vocab as the last block dim (no wrapper-side pad); the row
            # axis may over-cover `rows` — out-of-bounds rows masked in-kernel.
            in_specs=[pl.BlockSpec((ts, V), lambda t: (t, 0))],
            out_specs=pl.BlockSpec((1, 8, 128), lambda t: (t, 0, 0)),
        ),
        compiler_params=pltpu.CompilerParams(
            dimension_semantics=("parallel",),
            vmem_limit_bytes=vmem_limit,
        ),
        cost_estimate=pl.CostEstimate(
            flops=5 * rows * v_lanes,
            transcendentals=rows * v_lanes,
            bytes_accessed=rows * V * itemsize + num_tiles * 8 * 128 * 4,
        ),
    )(x2)

    # Tiny cross-tile reduction of per-tile partial sums in plain JAX.
    return -jnp.sum(partials[:, 0, 0])


def captioning_loss_ref(x):
    p = jax.nn.softmax(x.astype(jnp.float32), axis=2)
    return -jnp.sum(p)


if __name__ == "__main__":
    key = jax.random.PRNGKey(0)
    B, S, V = 2, 8, 32  # [batch, seq, vocab]
    x = jax.random.normal(key, (B, S, V), dtype=jnp.float32)

    loss = captioning_loss(x)
    jax.block_until_ready(loss)

    ref = captioning_loss_ref(x)
    assert jnp.allclose(loss, ref, atol=1e-4, rtol=1e-4), (loss, ref)

    print("KERNEL_OK")
</pallas_src>

<mosaic_0001>
module attributes {stable_mosaic.version = 11 : i64} {
  func.func @_captioning_loss_kernel(%arg0: i32, %arg1: memref<16x32xf32, #tpu.memory_space<vmem>>, %arg2: memref<1x8x128xf32, #tpu.memory_space<vmem>>) attributes {dimension_semantics = [#tpu.dimension_semantics<parallel>], iteration_bounds = array<i64: 1>, scalar_prefetch = 0 : i64, scratch_operands = 0 : i64, tpu.core_type = #tpu.core_type<tc>, window_params = [{transform_indices = @transform_0, window_bounds = array<i64: 16, 32>}, {transform_indices = @transform_1, window_bounds = array<i64: 1, 8, 128>}]} {
    %c0 = arith.constant 0 : index
    %c0_0 = arith.constant 0 : index
    %0 = vector.load %arg1[%c0, %c0_0] : memref<16x32xf32, #tpu.memory_space<vmem>>, vector<16x32xf32>
    %cst = arith.constant dense<0xFF800000> : vector<16xf32>
    %1 = vector.multi_reduction <maximumf>, %0, %cst [1] : vector<16x32xf32> to vector<16xf32>
    %2 = vector.shape_cast %1 : vector<16xf32> to vector<16x1xf32>
    %3 = vector.broadcast %2 : vector<16x1xf32> to vector<16x32xf32>
    %4 = arith.subf %0, %3 : vector<16x32xf32>
    %5 = math.exp %4 : vector<16x32xf32>
    %cst_1 = arith.constant dense<0.000000e+00> : vector<16xf32>
    %6 = vector.multi_reduction <add>, %5, %cst_1 [1] : vector<16x32xf32> to vector<16xf32>
    %7 = vector.shape_cast %6 : vector<16xf32> to vector<16x1xf32>
    %8 = tpu.reciprocal %7 : vector<16x1xf32> -> vector<16x1xf32>
    %9 = vector.broadcast %8 : vector<16x1xf32> to vector<16x32xf32>
    %10 = arith.mulf %5, %9 : vector<16x32xf32>
    %cst_2 = arith.constant dense<0.000000e+00> : vector<16xf32>
    %11 = vector.multi_reduction <add>, %10, %cst_2 [1] : vector<16x32xf32> to vector<16xf32>
    %12 = vector.shape_cast %11 : vector<16xf32> to vector<16x1xf32>
    %c16_i32 = arith.constant 16 : i32
    %13 = arith.muli %arg0, %c16_i32 : i32
    %14 = tpu.iota {dimensions = array<i32: 0>} : vector<16x1xi32>
    %15 = vector.broadcast %13 : i32 to vector<16x1xi32>
    %16 = arith.addi %15, %14 : vector<16x1xi32>
    %c16_i32_3 = arith.constant 16 : i32
    %17 = vector.broadcast %c16_i32_3 : i32 to vector<16x1xi32>
    %18 = arith.cmpi slt, %16, %17 : vector<16x1xi32>
    %cst_4 = arith.constant 0.000000e+00 : f32
    %19 = vector.broadcast %cst_4 : f32 to vector<16x1xf32>
    %20 = arith.select %18, %12, %19 : vector<16x1xi1>, vector<16x1xf32>
    %21 = vector.shape_cast %20 : vector<16x1xf32> to vector<1x16x1xf32>
    %cst_5 = arith.constant dense<0.000000e+00> : vector<1xf32>
    %22 = vector.multi_reduction <add>, %21, %cst_5 [1, 2] : vector<1x16x1xf32> to vector<1xf32>
    %23 = vector.shape_cast %22 : vector<1xf32> to vector<1x1x1xf32>
    %24 = vector.extract %23[0, 0, 0] : f32 from vector<1x1x1xf32>
    %25 = vector.broadcast %24 : f32 to vector<1x8x128xf32>
    %c0_6 = arith.constant 0 : index
    %c0_7 = arith.constant 0 : index
    %c0_8 = arith.constant 0 : index
    %26 = vector.load %arg2[%c0_6, %c0_7, %c0_8] : memref<1x8x128xf32, #tpu.memory_space<vmem>>, vector<1x8x128xf32>
    tpu.vector_store %arg2[%c0_6, %c0_7, %c0_8], %25 {strides = array<i32>} : memref<1x8x128xf32, #tpu.memory_space<vmem>>, vector<1x8x128xf32>,
    return
  }
  func.func @transform_0(%arg0: i32) -> (i32, i32) {
    %c0_i32 = arith.constant 0 : i32
    %c0_i32_0 = arith.constant 0 : i32
    return %arg0, %c0_i32 : i32, i32
  }
  func.func @transform_1(%arg0: i32) -> (i32, i32, i32) {
    %c0_i32 = arith.constant 0 : i32
    %c0_i32_0 = arith.constant 0 : i32
    %c0_i32_1 = arith.constant 0 : i32
    return %arg0, %c0_i32, %c0_i32_0 : i32, i32, i32
  }
}

</mosaic_0001>

<bundles_post_ra>
// kernel: tpu_custom_call.1
= control target key start
LH: loop header
LB: loop body
LE: loop exit
PB: predicated region body
PF: predicated region fallthrough
CT: control target
= control target key end

     0   :  { %6 = vsyncpa [#allocation3], 0  ;;  %s217_s0 = inlined_call_operand.hbm [shape: f32[16,32], index: 0, kind: input, shape index: {}]   ;;  %s218_s1 = inlined_call_operand.hbm [shape: f32[1,8,128], index: 1, kind: output, shape index: {}]  }
   0x1   :  { %7 = vsyncpa [#allocation4], 0  ;;  %s12_s8 = sshll.u32 %s217_s0, 4  ;;  %s191_s9 = smov [#allocation2]   ;;  %s13_s8 = int_to_ptr.hbm [resolvable:$true] %s12_s8 }
   0x2   :  { %s14_s10 = sshll.u32 %s191_s9, 4  ;;  %s192_s11 = smov 128   ;;  %s15_s10 = int_to_ptr.vmem [resolvable:$true] %s14_s10 }
   0x3   :  { %s193_s12 = smov 8  }
   0x4   :  { %20 = dma.hbm_to_vmem [thread:$0]  %s13_s8, 256, %s15_s10, [#allocation3], %s192_s11, %s192_s11, %s193_s12  }
   0x5   :  { %187 = dma.done.wait [#allocation3], 256  }
   0x6   :  { %188 = vsyncadd [#allocation3], 4294967040  ;;  %vm27_vm0 = vcmask 261120   ;;  %v25_v0 = vld [vmem:[#allocation2] sm:$0xff]  ;;  %v26_v2 = vld [vmem:[#allocation2 + $0x8] sm:$0xff]  ;;  %vm93_vm9 = vcmask 7168  }
   0x7   :  { %v28_v1 = vsel %vm27_vm0, %v25_v0, -inf  ;;  %v31_v3 = vsel %vm27_vm0, %v26_v2, -inf  ;;  %s194_s0 = smov [#allocation5]   ;;  %s115_s16 = sshll.u32 %s218_s1, 4  ;;  %s116_s16 = int_to_ptr.hbm [resolvable:$true] %s115_s16 }
   0x8   :  { %29 = vmax.xlane.f32.xlu0 %v28_v1  ;;  %s113_s13 = sshll.u32 %s194_s0, 4  ;;  %s114_s13 = int_to_ptr.vmem [resolvable:$true] %s113_s13 }
  0x10   :  { %32 = vmax.xlane.f32.xlu0 %v31_v3 }
  0x7b   :  { %v30_v4 = vpop.xlane.xlu0 %29 }
  0x7c   :  { %v34_v5 = vsub.f32 %v25_v0, %v30_v4 }
  0x7e   :  { %v36_v6 = vmul.f32 1.442695, %v34_v5 }
  0x80   :  { %131 = vpow2.f32 %v36_v6 }
  0x83   :  { %v33_v7 = vpop.xlane.xlu0 %32 }
  0x84   :  { %v35_v8 = vsub.f32 %v26_v2, %v33_v7 }
  0x86   :  { %v132_v9 = vpop.eup %131  ;;  %v38_v10 = vmul.f32 1.442695, %v35_v8 }
  0x87   :  { %v40_v11 = vsel %vm27_vm0, %v132_v9, 0.0 }
  0x88   :  { %133 = vpow2.f32 %v38_v10  ;;  %41 = vadd.xlane.f32.xlu1 %v40_v11 }
  0x8e   :  { %v134_v12 = vpop.eup %133 }
  0x8f   :  { %v43_v13 = vsel %vm27_vm0, %v134_v12, 0.0 }
  0x90   :  { %44 = vadd.xlane.f32.xlu1 %v43_v13 }
  0xfb   :  { %v42_v14 = vpop.xlane.xlu1 %41 }
  0xfc   :  { %135 = vrcp.f32 %v42_v14  ;;  %v57_v19 = vand.u32 2147483648, %v42_v14  ;;  %v55_v21 = vand.u32 2147483647, %v42_v14  ;;  %vm51_vm2 = vweird.f32 %v42_v14 }
  0xfe   :  { %v58_v24 = vor.u32 1.1754944e-38, %v57_v19  ;;  %vm56_vm4 = vcmp.eq.f32.partialorder %v55_v21, 8.507059e+37 }
 0x102   :  { %v136_v15 = vpop.eup %135 }
 0x103   :  { %v47_v16 = vmul.f32 %v136_v15, %v42_v14  ;;  %v45_v17 = vpop.xlane.xlu1 %44  ;;  %vm52_vm1 = vweird.f32 %v136_v15 }
 0x104   :  { %137 = vrcp.f32 %v45_v17  ;;  %vm53_vm3 = vmor %vm51_vm2, %vm52_vm1  ;;  %v71_v30 = vand.u32 2147483648, %v45_v17  ;;  %v69_v32 = vand.u32 2147483647, %v45_v17  ;;  %vm65_vm6 = vweird.f32 %v45_v17 }
 0x105   :  { %v48_v18 = vsub.f32 1.0, %v47_v16 }
 0x106   :  { %v72_v35 = vor.u32 1.1754944e-38, %v71_v30  ;;  %vm70_vm8 = vcmp.eq.f32.partialorder %v69_v32, 8.507059e+37 }
 0x107   :  { %v49_v20 = vmul.f32 %v136_v15, %v48_v18 }
 0x109   :  { %v50_v22 = vadd.f32 %v136_v15, %v49_v20 }
 0x10a   :  { %v138_v23 = vpop.eup %137 }
 0x10b   :  { %v61_v25 = vmul.f32 %v138_v23, %v45_v17  ;;  %v54_v26 = vsel %vm53_vm3, %v136_v15, %v50_v22  ;;  %vm66_vm5 = vweird.f32 %v138_v23 }
 0x10c   :  { %v59_v27 = vsel %vm56_vm4, %v58_v24, %v54_v26  ;;  %vm67_vm7 = vmor %vm65_vm6, %vm66_vm5 }
 0x10d   :  { %v62_v28 = vsub.f32 1.0, %v61_v25  ;;  %v74_v29 = vmul.f32 %v132_v9, %v59_v27 }
 0x10f   :  { %v63_v31 = vmul.f32 %v138_v23, %v62_v28  ;;  %v76_v33 = vsel %vm27_vm0, %v74_v29, 0.0 }
 0x110   :  { %77 = vadd.xlane.f32.xlu2 %v76_v33 }
 0x111   :  { %v64_v34 = vadd.f32 %v138_v23, %v63_v31 }
 0x113   :  { %v68_v36 = vsel %vm67_vm7, %v138_v23, %v64_v34 }
 0x114   :  { %v73_v37 = vsel %vm70_vm8, %v72_v35, %v68_v36 }
 0x115   :  { %v75_v38 = vmul.f32 %v134_v12, %v73_v37 }
 0x117   :  { %v79_v39 = vsel %vm27_vm0, %v75_v38, 0.0 }
 0x118   :  { %80 = vadd.xlane.f32.xlu2 %v79_v39 }
 0x183   :  { %v78_v40 = vpop.xlane.xlu2 %77 }
 0x184   :  { %v94_v42 = vsel %vm93_vm9, %v78_v40, 0.0 }
 0x18b   :  { %v81_v41 = vpop.xlane.xlu2 %80 }
 0x18c   :  { %v95_v43 = vsel %vm93_vm9, %v81_v41, 0.0 }
 0x18d   :  { %v96_v44 = vadd.f32 %v95_v43, %v94_v42 }
 0x18f   :  { %97 = vadd.xlane.f32.xlu0 %v96_v44 }
 0x202   :  { %v98_v45 = vpop.xlane.xlu0 %97 }
 0x203   :  { %v99_v46 = vrot.slane %v98_v45, 4 }
 0x205   :  { %v100_v47 = vadd.f32 %v99_v46, %v98_v45 }
 0x207   :  { %v101_v48 = vrot.slane %v100_v47, 2 }
 0x209   :  { %v102_v49 = vadd.f32 %v101_v48, %v100_v47 }
 0x20b   :  { %v103_v50 = vrot.slane %v102_v49, 1 }
 0x20d   :  { %v104_v51 = vadd.f32 %v103_v50, %v102_v49 }
 0x20f   :  { %125 = vpush %v104_v51 }
 0x240   :  { %s126_s17 = spop %125 }
 0x241   :  { %v106_v52 = vstv %s126_s17 }
 0x242   :  { %107 = vst [vmem:[#allocation5] sm:$0xff] %v106_v52 }
 0x243   :  { %118 = dma.vmem_to_hbm [thread:$0]  %s114_s13, 128, %s116_s16, [#allocation4]  }
 0x244   :  { %189 = dma.done.wait [#allocation4], 128  }
 0x245   :  { %190 = vsyncadd [#allocation4], 4294967168 }
 0x246   :  { %123 = vsyncpa [#allocation3], 1 }
 0x247   :  { %124 = vsyncpa [#allocation4], 1 }

</bundles_post_ra>
